<compile_context>
chip_gen: v5e
topology: v5e:2x2
jax: 0.10.0
libtpu: 0.0.40
codegen_flags: <defaults>
</compile_context>

<pallas_src>
import functools

import jax
import jax.numpy as jnp
from jax.experimental import pallas as pl
from jax.experimental.pallas import tpu as pltpu

_EPS = 1e-5
_VMEM_BUDGET = 48 * 1024 * 1024   # conservative: fits v7x's 64 MiB physical VMEM
_HW_TILE_MAX = 4096               # lanes per tile in the tiled path (multiple of 128)


def _round_up(a, b):
    return (a + b - 1) // b * b


def _scale_shift_from_moments(s, ss, gamma, alpha, beta, *, hw, c_real):
    """Fused per-channel scale/shift from per-channel sum & sum-of-squares.

    s, ss, gamma, alpha, beta: (C_pad, 1) float32.
    out = x * scale + shift == gamma * ((x - mean) * inv_std + alpha * means_n) + beta
    """
    inv_hw = 1.0 / hw
    mean = s * inv_hw                                     # (C_pad, 1)
    var = jnp.maximum(ss * inv_hw - mean * mean, 0.0)     # biased (InstanceNorm)
    inv_std = jax.lax.rsqrt(var + _EPS)                   # per-channel rsqrt (EUP)

    c_pad = mean.shape[0]
    if c_pad == c_real:
        m = jnp.sum(mean) / c_real
        d = mean - m
    else:
        # Exclude zero-padded channels from the cross-channel statistics.
        ch = jax.lax.broadcasted_iota(jnp.int32, mean.shape, 0)
        mask = (ch < c_real).astype(jnp.float32)
        m = jnp.sum(mean * mask) / c_real
        d = (mean - m) * mask
    # torch.var default is unbiased (C-1). NOTE: c_real == 1 yields NaN, same as torch.
    v = jnp.sum(d * d) / (c_real - 1)
    means_n = (mean - m) * jax.lax.rsqrt(v + _EPS)

    scale = gamma * inv_std
    shift = beta + gamma * (alpha * means_n - mean * inv_std)
    return scale, shift


# ------------------------- whole-sample fast path -------------------------

def _fused_kernel(x_ref, p_ref, o_ref, *, hw, c_real):
    # x_ref: (1, C_pad, HW_pad); p_ref: (1, 3, C_pad, 1); o_ref: (1, C_pad, HW_pad)
    x = x_ref[0].astype(jnp.float32)
    s = jnp.sum(x, axis=1, keepdims=True)
    ss = jnp.sum(x * x, axis=1, keepdims=True)

    p = p_ref[0].astype(jnp.float32)          # (3, C_pad, 1)
    gamma, alpha, beta = p[0], p[1], p[2]

    scale, shift = _scale_shift_from_moments(
        s, ss, gamma, alpha, beta, hw=hw, c_real=c_real)
    o_ref[0] = (x * scale + shift).astype(o_ref.dtype)


# ------------------------- HW-tiled two-pass path -------------------------

def _stats_kernel(x_ref, p_ref, ss_ref, sum_acc, sq_acc, *, hw, c_real):
    t = pl.program_id(1)

    @pl.when(t == 0)
    def _():
        sum_acc[...] = jnp.zeros_like(sum_acc)
        sq_acc[...] = jnp.zeros_like(sq_acc)

    x = x_ref[0].astype(jnp.float32)          # (C_pad, HW_TILE)
    sum_acc[...] += jnp.sum(x, axis=1, keepdims=True)
    sq_acc[...] += jnp.sum(x * x, axis=1, keepdims=True)

    @pl.when(t == pl.num_programs(1) - 1)
    def _():
        p = p_ref[0].astype(jnp.float32)      # (3, C_pad, 1)
        gamma, alpha, beta = p[0], p[1], p[2]
        scale, shift = _scale_shift_from_moments(
            sum_acc[...], sq_acc[...], gamma, alpha, beta, hw=hw, c_real=c_real)
        ss_ref[0, 0] = scale
        ss_ref[0, 1] = shift


def _apply_kernel(x_ref, ss_ref, o_ref):
    x = x_ref[0].astype(jnp.float32)          # (C_pad, HW_TILE)
    scale = ss_ref[0, 0]                      # (C_pad, 1)
    shift = ss_ref[0, 1]                      # (C_pad, 1)
    o_ref[0] = (x * scale + shift).astype(o_ref.dtype)


# --------------------------------- wrapper ---------------------------------

def conditional_instance_norm_2d_plus(x, y, embed_weight, num_features, bias=True,
                                      *, max_vmem_bytes=_VMEM_BUDGET):
    """Forward of ConditionalInstanceNorm2dPlus.

    x: (N, C, H, W); y: (N,) int class ids; embed_weight: (num_classes, 3C or 2C).
    """
    N, C, H, W = x.shape
    assert C == num_features
    HW = H * W
    itemsize = jnp.dtype(x.dtype).itemsize

    # Embedding lookup + chunk (plain-JAX glue; gather stays outside the kernel).
    emb = embed_weight[y]
    if bias:
        gamma, alpha, beta = jnp.split(emb, 3, axis=-1)
    else:
        gamma, alpha = jnp.split(emb, 2, axis=-1)
        beta = jnp.zeros_like(gamma)

    # Lane/sublane-dense padding.
    sublanes = {4: 8, 2: 16, 1: 32}.get(itemsize, 8)
    c_pad = _round_up(C, sublanes)

    # Stacked conditioning params: one (N, 3, C_pad, 1) DMA per grid step.
    params = jnp.stack([gamma, alpha, beta], axis=1).astype(jnp.float32)  # (N, 3, C)
    if c_pad != C:
        params = jnp.pad(params, ((0, 0), (0, 0), (0, c_pad - C)))
    params = params.reshape(N, 3, c_pad, 1)

    hw_128 = _round_up(HW, 128)
    single_bytes = 4 * c_pad * hw_128 * itemsize          # in + out, double-buffered
    use_single = single_bytes + (2 << 20) <= max_vmem_bytes

    x2 = x.reshape(N, C, HW)

    if use_single:
        hw_pad = hw_128
    else:
        # Largest multiple of 128 that keeps ~4 buffered (C_pad, hw_tile) slabs in budget.
        per_128 = 4 * c_pad * 128 * itemsize
        n_128 = max(1, min(_HW_TILE_MAX // 128,
                           max(max_vmem_bytes, per_128) // per_128))
        hw_tile = min(128 * n_128, hw_128)
        hw_pad = _round_up(HW, hw_tile)

    if c_pad != C or hw_pad != HW:
        # Zero padding: contributes 0 to sum/sumsq; stats divide by the true HW/C.
        x2 = jnp.pad(x2, ((0, 0), (0, c_pad - C), (0, hw_pad - HW)))

    p_spec_1 = pl.BlockSpec((1, 3, c_pad, 1), lambda n: (n, 0, 0, 0))
    p_spec_2 = pl.BlockSpec((1, 3, c_pad, 1), lambda n, t: (n, 0, 0, 0))

    if use_single:
        vmem_limit = min(max(32 << 20, single_bytes + (4 << 20)), 60 << 20)
        x_spec = pl.BlockSpec((1, c_pad, hw_pad), lambda n: (n, 0, 0))
        out = pl.pallas_call(
            functools.partial(_fused_kernel, hw=float(HW), c_real=C),
            out_shape=jax.ShapeDtypeStruct((N, c_pad, hw_pad), x.dtype),
            grid=(N,),
            in_specs=[x_spec, p_spec_1],
            out_specs=x_spec,
            compiler_params=pltpu.CompilerParams(
                dimension_semantics=("parallel",),
                vmem_limit_bytes=vmem_limit),
        )(x2, params)
    else:
        n_tiles = hw_pad // hw_tile
        tile_bytes = 4 * c_pad * hw_tile * itemsize
        vmem_limit = min(max(32 << 20, tile_bytes + (4 << 20)), 60 << 20)
        x_spec = pl.BlockSpec((1, c_pad, hw_tile), lambda n, t: (n, 0, t))
        ss_spec = pl.BlockSpec((1, 2, c_pad, 1), lambda n, t: (n, 0, 0, 0))

        # Pass 1: accumulate per-channel sum/sumsq across HW tiles, emit scale/shift.
        scale_shift = pl.pallas_call(
            functools.partial(_stats_kernel, hw=float(HW), c_real=C),
            out_shape=jax.ShapeDtypeStruct((N, 2, c_pad, 1), jnp.float32),
            grid=(N, n_tiles),
            in_specs=[x_spec, p_spec_2],
            out_specs=ss_spec,
            scratch_shapes=[pltpu.VMEM((c_pad, 1), jnp.float32),
                            pltpu.VMEM((c_pad, 1), jnp.float32)],
            compiler_params=pltpu.CompilerParams(
                dimension_semantics=("parallel", "arbitrary"),
                vmem_limit_bytes=vmem_limit),
        )(x2, params)

        # Pass 2: fused per-element FMA apply.
        out = pl.pallas_call(
            _apply_kernel,
            out_shape=jax.ShapeDtypeStruct((N, c_pad, hw_pad), x.dtype),
            grid=(N, n_tiles),
            in_specs=[x_spec, ss_spec],
            out_specs=x_spec,
            compiler_params=pltpu.CompilerParams(
                dimension_semantics=("parallel", "parallel"),
                vmem_limit_bytes=vmem_limit),
        )(x2, scale_shift)

    return out[:, :C, :HW].reshape(N, C, H, W)


# -------------------------------- reference --------------------------------

def _reference(x, y, embed_weight, num_features, bias=True):
    means = jnp.mean(x, axis=(2, 3))
    m = jnp.mean(means, axis=-1, keepdims=True)
    v = jnp.var(means, axis=-1, keepdims=True, ddof=1)
    means = (means - m) / jnp.sqrt(v + 1e-5)
    mu = jnp.mean(x, axis=(2, 3), keepdims=True)
    var = jnp.var(x, axis=(2, 3), keepdims=True)
    h = (x - mu) / jnp.sqrt(var + 1e-5)
    emb = embed_weight[y]
    if bias:
        gamma, alpha, beta = jnp.split(emb, 3, axis=-1)
    else:
        gamma, alpha = jnp.split(emb, 2, axis=-1)
        beta = jnp.zeros_like(gamma)
    h = h + means[..., None, None] * alpha[..., None, None]
    return gamma[..., None, None] * h + beta[..., None, None]


if __name__ == "__main__":
    key = jax.random.PRNGKey(0)

    # --- Test 1: whole-sample fast path (bias=True) ---
    num_features, num_classes = 4, 10
    N, C, H, W = 2, num_features, 16, 16
    k1, k2, k3, key = jax.random.split(key, 4)
    x = jax.random.normal(k1, (N, C, H, W), dtype=jnp.float32)
    y = jax.random.randint(k2, (N,), 0, num_classes)
    # PyTorch init (bias=True): first 2C cols ~ Normal(1, 0.02), last C cols zero.
    w_ga = 1.0 + 0.02 * jax.random.normal(
        k3, (num_classes, 2 * num_features), dtype=jnp.float32)
    embed_weight = jnp.concatenate(
        [w_ga, jnp.zeros((num_classes, num_features), dtype=jnp.float32)], axis=-1)

    out = conditional_instance_norm_2d_plus(x, y, embed_weight, num_features, bias=True)
    out = jax.block_until_ready(out)
    ref = _reference(x, y, embed_weight, num_features, bias=True)
    if not jnp.allclose(out, ref, atol=2e-4, rtol=2e-4):
        raise AssertionError(
            "fast-path mismatch vs reference, max err %e"
            % float(jnp.max(jnp.abs(out - ref))))

    # --- Test 2: HW-tiled two-pass path (forced), bias=False, padded HW ---
    num_features2 = 8
    N2, C2, H2, W2 = 2, num_features2, 18, 20
    k4, k5, k6, key = jax.random.split(key, 4)
    x_b = jax.random.normal(k4, (N2, C2, H2, W2), dtype=jnp.float32)
    y_b = jax.random.randint(k5, (N2,), 0, num_classes)
    embed_weight_b = 1.0 + 0.02 * jax.random.normal(
        k6, (num_classes, 2 * num_features2), dtype=jnp.float32)

    out_b = conditional_instance_norm_2d_plus(
        x_b, y_b, embed_weight_b, num_features2, bias=False, max_vmem_bytes=0)
    out_b = jax.block_until_ready(out_b)
    ref_b = _reference(x_b, y_b, embed_weight_b, num_features2, bias=False)
    if not jnp.allclose(out_b, ref_b, atol=2e-4, rtol=2e-4):
        raise AssertionError(
            "tiled-path mismatch vs reference, max err %e"
            % float(jnp.max(jnp.abs(out_b - ref_b))))

    print("KERNEL_OK")
</pallas_src>

<mosaic_0001>
module attributes {stable_mosaic.version = 11 : i64} {
  func.func @_fused_kernel(%arg0: i32, %arg1: memref<1x8x256xf32, #tpu.memory_space<vmem>>, %arg2: memref<1x3x8x1xf32, #tpu.memory_space<vmem>>, %arg3: memref<1x8x256xf32, #tpu.memory_space<vmem>>) attributes {dimension_semantics = [#tpu.dimension_semantics<parallel>], iteration_bounds = array<i64: 2>, scalar_prefetch = 0 : i64, scratch_operands = 0 : i64, tpu.core_type = #tpu.core_type<tc>, window_params = [{transform_indices = @transform_0, window_bounds = array<i64: 1, 8, 256>}, {transform_indices = @transform_1, window_bounds = array<i64: 1, 3, 8, 1>}, {transform_indices = @transform_2, window_bounds = array<i64: 1, 8, 256>}]} {
    %c0 = arith.constant 0 : index
    %c0_0 = arith.constant 0 : index
    %c0_1 = arith.constant 0 : index
    %0 = vector.load %arg1[%c0, %c0_0, %c0_1] : memref<1x8x256xf32, #tpu.memory_space<vmem>>, vector<1x8x256xf32>
    %1 = vector.shape_cast %0 : vector<1x8x256xf32> to vector<8x256xf32>
    %cst = arith.constant dense<0.000000e+00> : vector<8xf32>
    %2 = vector.multi_reduction <add>, %1, %cst [1] : vector<8x256xf32> to vector<8xf32>
    %3 = vector.shape_cast %2 : vector<8xf32> to vector<8x1xf32>
    %4 = arith.mulf %1, %1 : vector<8x256xf32>
    %cst_2 = arith.constant dense<0.000000e+00> : vector<8xf32>
    %5 = vector.multi_reduction <add>, %4, %cst_2 [1] : vector<8x256xf32> to vector<8xf32>
    %6 = vector.shape_cast %5 : vector<8xf32> to vector<8x1xf32>
    %c0_3 = arith.constant 0 : index
    %c0_4 = arith.constant 0 : index
    %c0_5 = arith.constant 0 : index
    %c0_6 = arith.constant 0 : index
    %7 = vector.load %arg2[%c0_3, %c0_4, %c0_5, %c0_6] : memref<1x3x8x1xf32, #tpu.memory_space<vmem>>, vector<1x3x8x1xf32>
    %8 = vector.shape_cast %7 : vector<1x3x8x1xf32> to vector<3x8x1xf32>
    %9 = vector.extract_strided_slice %8 {offsets = [0, 0, 0], sizes = [1, 8, 1], strides = [1, 1, 1]} : vector<3x8x1xf32> to vector<1x8x1xf32>
    %10 = vector.shape_cast %9 : vector<1x8x1xf32> to vector<8x1xf32>
    %11 = vector.extract_strided_slice %8 {offsets = [1, 0, 0], sizes = [1, 8, 1], strides = [1, 1, 1]} : vector<3x8x1xf32> to vector<1x8x1xf32>
    %12 = vector.shape_cast %11 : vector<1x8x1xf32> to vector<8x1xf32>
    %13 = vector.extract_strided_slice %8 {offsets = [2, 0, 0], sizes = [1, 8, 1], strides = [1, 1, 1]} : vector<3x8x1xf32> to vector<1x8x1xf32>
    %14 = vector.shape_cast %13 : vector<1x8x1xf32> to vector<8x1xf32>
    %cst_7 = arith.constant 3.906250e-03 : f32
    %15 = vector.broadcast %cst_7 : f32 to vector<8x1xf32>
    %16 = arith.mulf %3, %15 : vector<8x1xf32>
    %cst_8 = arith.constant 3.906250e-03 : f32
    %17 = vector.broadcast %cst_8 : f32 to vector<8x1xf32>
    %18 = arith.mulf %6, %17 : vector<8x1xf32>
    %19 = arith.mulf %16, %16 : vector<8x1xf32>
    %20 = arith.subf %18, %19 : vector<8x1xf32>
    %cst_9 = arith.constant 0.000000e+00 : f32
    %21 = vector.broadcast %cst_9 : f32 to vector<8x1xf32>
    %22 = arith.maximumf %20, %21 : vector<8x1xf32>
    %cst_10 = arith.constant 9.99999974E-6 : f32
    %23 = vector.broadcast %cst_10 : f32 to vector<8x1xf32>
    %24 = arith.addf %22, %23 : vector<8x1xf32>
    %25 = math.rsqrt %24 : vector<8x1xf32>
    %26 = tpu.iota {dimensions = array<i32: 0>} : vector<8x1xi32>
    %c4_i32 = arith.constant 4 : i32
    %27 = vector.broadcast %c4_i32 : i32 to vector<8x1xi32>
    %28 = arith.cmpi slt, %26, %27 : vector<8x1xi32>
    %29 = arith.extui %28 : vector<8x1xi1> to vector<8x1xi32>
    %30 = arith.sitofp %29 : vector<8x1xi32> to vector<8x1xf32>
    %31 = arith.mulf %16, %30 : vector<8x1xf32>
    %32 = vector.shape_cast %31 : vector<8x1xf32> to vector<1x8x1xf32>
    %cst_11 = arith.constant dense<0.000000e+00> : vector<1xf32>
    %33 = vector.multi_reduction <add>, %32, %cst_11 [1, 2] : vector<1x8x1xf32> to vector<1xf32>
    %34 = vector.shape_cast %33 : vector<1xf32> to vector<1x1x1xf32>
    %35 = vector.extract %34[0, 0, 0] : f32 from vector<1x1x1xf32>
    %cst_12 = arith.constant 4.000000e+00 : f32
    %36 = arith.divf %35, %cst_12 : f32
    %37 = vector.broadcast %36 : f32 to vector<8x1xf32>
    %38 = arith.subf %16, %37 : vector<8x1xf32>
    %39 = arith.mulf %38, %30 : vector<8x1xf32>
    %40 = arith.mulf %39, %39 : vector<8x1xf32>
    %41 = vector.shape_cast %40 : vector<8x1xf32> to vector<1x8x1xf32>
    %cst_13 = arith.constant dense<0.000000e+00> : vector<1xf32>
    %42 = vector.multi_reduction <add>, %41, %cst_13 [1, 2] : vector<1x8x1xf32> to vector<1xf32>
    %43 = vector.shape_cast %42 : vector<1xf32> to vector<1x1x1xf32>
    %44 = vector.extract %43[0, 0, 0] : f32 from vector<1x1x1xf32>
    %cst_14 = arith.constant 3.000000e+00 : f32
    %45 = arith.divf %44, %cst_14 : f32
    %46 = vector.broadcast %36 : f32 to vector<8x1xf32>
    %47 = arith.subf %16, %46 : vector<8x1xf32>
    %cst_15 = arith.constant 9.99999974E-6 : f32
    %48 = arith.addf %45, %cst_15 : f32
    %49 = math.rsqrt %48 : f32
    %50 = vector.broadcast %49 : f32 to vector<8x1xf32>
    %51 = arith.mulf %47, %50 : vector<8x1xf32>
    %52 = arith.mulf %10, %25 : vector<8x1xf32>
    %53 = arith.mulf %12, %51 : vector<8x1xf32>
    %54 = arith.mulf %16, %25 : vector<8x1xf32>
    %55 = arith.subf %53, %54 : vector<8x1xf32>
    %56 = arith.mulf %10, %55 : vector<8x1xf32>
    %57 = arith.addf %14, %56 : vector<8x1xf32>
    %58 = vector.broadcast %52 : vector<8x1xf32> to vector<8x256xf32>
    %59 = arith.mulf %1, %58 : vector<8x256xf32>
    %60 = vector.broadcast %57 : vector<8x1xf32> to vector<8x256xf32>
    %61 = arith.addf %59, %60 : vector<8x256xf32>
    %c0_16 = arith.constant 0 : index
    %c0_17 = arith.constant 0 : index
    %c0_18 = arith.constant 0 : index
    %62 = vector.load %arg3[%c0_16, %c0_17, %c0_18] : memref<1x8x256xf32, #tpu.memory_space<vmem>>, vector<1x8x256xf32>
    %63 = vector.shape_cast %62 : vector<1x8x256xf32> to vector<8x256xf32>
    %64 = vector.shape_cast %61 : vector<8x256xf32> to vector<1x8x256xf32>
    tpu.vector_store %arg3[%c0_16, %c0_17, %c0_18], %64 {strides = array<i32>} : memref<1x8x256xf32, #tpu.memory_space<vmem>>, vector<1x8x256xf32>,
    return
  }
  func.func @transform_0(%arg0: i32) -> (i32, i32, i32) {
    %c0_i32 = arith.constant 0 : i32
    %c0_i32_0 = arith.constant 0 : i32
    %c0_i32_1 = arith.constant 0 : i32
    return %arg0, %c0_i32, %c0_i32_0 : i32, i32, i32
  }
  func.func @transform_1(%arg0: i32) -> (i32, i32, i32, i32) {
    %c0_i32 = arith.constant 0 : i32
    %c0_i32_0 = arith.constant 0 : i32
    %c0_i32_1 = arith.constant 0 : i32
    %c0_i32_2 = arith.constant 0 : i32
    return %arg0, %c0_i32, %c0_i32_0, %c0_i32_1 : i32, i32, i32, i32
  }
  func.func @transform_2(%arg0: i32) -> (i32, i32, i32) {
    %c0_i32 = arith.constant 0 : i32
    %c0_i32_0 = arith.constant 0 : i32
    %c0_i32_1 = arith.constant 0 : i32
    return %arg0, %c0_i32, %c0_i32_0 : i32, i32, i32
  }
}

</mosaic_0001>

<bundles_post_ra>
// kernel: tpu_custom_call.1
= control target key start
LH: loop header
LB: loop body
LE: loop exit
PB: predicated region body
PF: predicated region fallthrough
CT: control target
= control target key end

     0   :  { %7 = vsyncpa [#allocation3], 0  ;;  %s650_s0 = inlined_call_operand.vmem [shape: f32[2,8,256], index: 0, kind: input, shape index: {}]   ;;  %s651_s1 = inlined_call_operand.vmem [shape: f32[2,3,8,1], index: 1, kind: input, shape index: {}]   ;;  %s652_s2 = inlined_call_operand.hbm [shape: f32[2,8,256], index: 2, kind: output, shape index: {}]  }
   0x1   :  { %9 = vsyncpa [#allocation3 + $0x1], 0  ;;  %s528_s9 = smov 0   ;;  %s530_s10 = smov 0  }
   0x2   :  { %s532_s11 = smov 0   ;;  %s534_s12 = smov 0  }
   0x3 LB: > { %s549_s13 = sadd.s32 4294967295, %s507_s12   ;;  %s365_s14 = sadd.s32 4294967294, %s507_s12   ;;  %s507_s12 = sphi %s534_s12, %s658_s12   ;;  %s503_s11 = sphi %s532_s11, %s657_s11   ;;  %s499_s10 = sphi %s530_s10, %s656_s10   ;;  %s495_s9 = sphi %s528_s9, %s655_s9  }
   0x4   : > { %s553_s15 = sadd.s32 1, %s507_s12   ;;  %s74_s16 = sadd.s32 1, %s503_s11 }
   0x5   : > { %s71_s17 = ssub.s32 %s507_s12, %s553_s15  ;;  %p84_p0 = scmp.ne.s32.totalorder %s503_s11, %s499_s10 }
   0x6   : > { %p72_p1 = scmp.eq.s32.totalorder %s71_s17, 0  ;;  %p85_p2 = scmp.eq.s32.totalorder %s549_s13, 1 }
   0x7   : > { %p90_p3 = scmp.ne.s32.totalorder %s499_s10, %s495_s9  ;;  %p91_p4 = scmp.eq.s32.totalorder %s365_s14, 1 }
   0x8   : > { %s564_s18 = scalar_select %p72_p1, %s503_s11, %s74_s16  }
   0x9   : > { %p566_p5 = por %p85_p2, %p84_p0  ;;  %p570_p6 = por %p91_p4, %p90_p3 }
   0xa   : > { %p368_p7 = scmp.ge.s32.totalorder %s507_s12, 1  ;;  %p125_p8 = scmp.lt.s32.totalorder %s507_s12, 3 }
   0xc   : > { %p126_p9 = pnand %p368_p7, %p125_p8 }
   0xd   : > { %p152_p10 = scmp.lt.s32.totalorder (!%p126_p9), %s549_s13, 1  ;;  %s149_s16 = sand.u32 (!%p126_p9), 1, %s499_s10  }
   0xe   : > { %129 = sbr.rel (%p126_p9) target bundleno = 696 (0x2b8), region = 28  ;;  %s369_s17 = sshll.u32 (!%p126_p9), %s149_s16, 4 }
  0x13   : > { %s578_s21 = scalar_select %p152_p10, %s549_s13, 1  ;;  %v191_v3 = vlaneseq  ;;  %v509_v6 = vmov 0.0   ;;  %vm197_vm1 = vcmask 7168   ;;  %v510_v11 = vmov 4.0  }
  0x14   : > { %437 = vrcp.f32 %v510_v11  ;;  %v511_v33 = vmov 3.0   ;;  %v512_v36 = vmov 0  }
  0x15   : > { %s379_s22 = sshll.u32 %s578_s21, 4  ;;  %v192_v4 = vshrl.u32 %v191_v3, 7  ;;  %439 = vrcp.f32 %v511_v33  ;;  %435 = vset.pattern.permute.xlu2 %v512_v36  ;;  %436 = vset.pattern.permute.xlu0 %v512_v36  ;;  %s381_s29 = smul.u32 24, %s578_s21 }
  0x16   : > { %s156_s25 = scalar_lea.vmem %s650_s0, %s379_s22  ;;  %s380_s21 = sshll.u32 %s549_s13, 4 }
  0x17   : > { %v584_v0 = vld [vmem:[%s156_s25] sm:$0xff]  ;;  %v586_v1 = vld [vmem:[%s156_s25 + $0x8] sm:$0xff]  ;;  %vm193_vm0 = vcmp.lt.s32.totalorder %v192_v4, 4  ;;  %s609_s4 = scalar_lea.vmem %s651_s1, %s381_s29  ;;  %s289_s24 = scalar_lea.hbm %s652_s2, %s380_s21 }
  0x18   : > { %v164_v2 = vadd.f32 %v586_v1, %v584_v0  ;;  %v373_v7 = vsel %vm193_vm0, 1.0, %v509_v6  ;;  %v167_v30 = vmul.f32 %v584_v0, %v584_v0  ;;  %v168_v31 = vmul.f32 %v586_v1, %v586_v1  ;;  %v172_v59 = vld [vmem:[%s609_s4] sm:$0xff]  ;;  %s151_s25 = scalar_lea.vmem [#allocation2], %s369_s17  ;;  %s278_s13 = scalar_lea.sflag [#allocation3], %s149_s16 }
  0x1a   : > { %165 = vadd.xlane.f32.xlu0 %v164_v2  ;;  %v438_v12 = vpop.eup %437  ;;  %v169_v32 = vadd.f32 %v168_v31, %v167_v30 }
  0x1b   : > { %v209_v13 = vmul.f32 4.0, %v438_v12  ;;  %vm213_vm2 = vweird.f32 %v438_v12  ;;  %v440_v34 = vpop.eup %439 }
  0x1c   : > { %v232_v35 = vmul.f32 3.0, %v440_v34  ;;  %vm236_vm3 = vweird.f32 %v440_v34 }
  0x1d   : > { %v210_v14 = vsub.f32 1.0, %v209_v13 }
  0x1e   : > { %v233_v37 = vsub.f32 1.0, %v232_v35 }
  0x1f   : > { %v211_v18 = vmul.f32 %v438_v12, %v210_v14 }
  0x20   : > { %v234_v41 = vmul.f32 %v440_v34, %v233_v37 }
  0x21   : > { %v212_v21 = vadd.f32 %v438_v12, %v211_v18 }
  0x22   : > { %v235_v44 = vadd.f32 %v440_v34, %v234_v41 }
  0x23   : > { %v214_v24 = vsel %vm213_vm2, %v438_v12, %v212_v21 }
  0x24   : > { %v237_v51 = vsel %vm236_vm3, %v440_v34, %v235_v44 }
  0x8d   : > { %v166_v5 = vpop.xlane.xlu0 %165 }
  0x8e   : > { %v590_v8 = vmul.f32 0.00390625, %v166_v5 }
  0x90   : > { %v196_v9 = vmul.f32 %v373_v7, %v590_v8  ;;  %v177_v47 = vmul.f32 %v590_v8, %v590_v8 }
  0x92   : > { %v198_v10 = vsel %vm197_vm1, %v196_v9, 0.0 }
  0x93   : > { %199 = vadd.xlane.f32.xlu0 %v198_v10  ;;  %v173_v10 = vld [vmem:[%s609_s4 + $0x8] sm:$0xff] }
 0x106   : > { %v200_v15 = vpop.xlane.xlu0 %199 }
 0x107   : > { %v201_v16 = vrot.slane %v200_v15, 4 }
 0x109   : > { %v202_v17 = vadd.f32 %v201_v16, %v200_v15  ;;  %v174_v16 = vld [vmem:[%s609_s4 + $0x10] sm:$0xff]  ;;  %s465_s4 = scalar_lea.hbm %s652_s2, 32 }
 0x10b   : > { %v203_v19 = vrot.slane %v202_v17, 2 }
 0x10d   : > { %v204_v20 = vadd.f32 %v203_v19, %v202_v17 }
 0x10f   : > { %v205_v22 = vrot.slane %v204_v20, 1 }
 0x111   : > { %v206_v23 = vadd.f32 %v205_v22, %v204_v20 }
 0x113   : > { %382 = vpush %v206_v23 }
 0x114   : > { %384 = vpush %v214_v24 }
 0x144   : > { %s383_s26 = spop %382 }
 0x145   : > { %s385_s27 = spop %384 }
 0x146   : > { %s216_s28 = smul.f32 %s385_s27, %s383_s26  ;;  %s291_s26 = sshll.u32 %s151_s25, 4  ;;  %s292_s26 = int_to_ptr.vmem [resolvable:$true] %s291_s26 }
 0x147   : > { %s293_s27 = sshll.u32 %s289_s24, 4  ;;  %s294_s27 = int_to_ptr.hbm [resolvable:$true] %s293_s27 }
 0x148   : > { %v217_v25 = vstv %s216_s28  ;;  %s459_s28 = sshra.s32 %s294_s27, 4  ;;  %s460_s28 = int_to_ptr.hbm [resolvable:$true] %s459_s28 }
 0x149   : > { %v595_v26 = vsub.f32 %v590_v8, %v217_v25  ;;  %s461_s29 = scalar_lea.hbm %s460_s28, 16  ;;  %p466_p0 = scmp.lt.s32.totalorder %s460_s28, %s652_s2 }
 0x14a   : > { %p462_p11 = scmp.ne.s32.totalorder %s460_s28, %s461_s29  ;;  %p467_p1 = scmp.lt.s32.totalorder %s465_s4, %s461_s29 }
 0x14b   : > { %v219_v27 = vmul.f32 %v373_v7, %v595_v26 }
 0x14c   : > { %p463_p12 = pnand %p462_p11, %p566_p5  ;;  %p468_p2 = por %p467_p1, %p466_p0 }
 0x14d   : > { %v220_v28 = vmul.f32 %v219_v27, %v219_v27 }
 0x14e   : > { %p464_p13 = pneg %p463_p12 }
 0x14f   : > { %v221_v29 = vsel %vm197_vm1, %v220_v28, 0.0 }
 0x150   : > { %222 = vadd.xlane.f32.xlu1 %v221_v29  ;;  %p469_p3 = pnand %p468_p2, %p464_p13 }
 0x158   : > { %170 = vadd.xlane.f32.xlu1 %v169_v32 }
 0x1c3   : > { %v223_v38 = vpop.xlane.xlu1 %222 }
 0x1c4   : > { %v224_v39 = vrot.slane %v223_v38, 4 }
 0x1c6   : > { %v225_v40 = vadd.f32 %v224_v39, %v223_v38 }
 0x1c8   : > { %v226_v42 = vrot.slane %v225_v40, 2 }
 0x1ca   : > { %v227_v43 = vadd.f32 %v226_v42, %v225_v40 }
 0x1cb   : > { %v171_v45 = vpop.xlane.xlu1 %170 }
 0x1cc   : > { %v176_v46 = vmul.f32 0.00390625, %v171_v45  ;;  %v228_v48 = vrot.slane %v227_v43, 1 }
 0x1ce   : > { %v178_v49 = vsub.f32 %v176_v46, %v177_v47  ;;  %v229_v50 = vadd.f32 %v228_v48, %v227_v43 }
 0x1d0   : > { %v179_v52 = vmax.f32 %v178_v49, 0.0  ;;  %386 = vpush %v229_v50 }
 0x1d1   : > { %388 = vpush %v237_v51 }
 0x1d2   : > { %v180_v53 = vadd.f32 1e-05, %v179_v52 }
 0x1d4   : > { %441 = vrsqrt.f32 %v180_v53  ;;  %vm187_vm5 = vweird.f32 %v180_v53 }
 0x1da   : > { %v442_v54 = vpop.eup %441 }
 0x1db   : > { %v182_v55 = vmul.f32 %v442_v54, %v180_v53  ;;  %vm188_vm4 = vweird.f32 %v442_v54 }
 0x1dc   : > { %vm189_vm6 = vmor %vm187_vm5, %vm188_vm4 }
 0x1dd   : > { %v183_v56 = vmul.f32 %v442_v54, %v182_v55 }
 0x1df   : > { %v184_v57 = vmul.f32 0.5, %v183_v56 }
 0x1e1   : > { %v185_v58 = vsub.f32 1.5, %v184_v57 }
 0x1e3   : > { %v186_v60 = vmul.f32 %v442_v54, %v185_v58 }
 0x1e5   : > { %v190_v61 = vsel %vm189_vm6, %v442_v54, %v186_v60 }
 0x1e6   : > { %v255_v62 = vmul.f32 %v190_v61, %v172_v59  ;;  %v257_v13 = vmul.f32 %v190_v61, %v590_v8 }
 0x1e8   : > { %263 = vperm.xlu2 %435, %v255_v62  }
 0x201   : > { %s387_s5 = spop %386 }
 0x202   : > { %s389_s6 = spop %388 }
 0x203   : > { %s239_s7 = smul.f32 %s389_s6, %s387_s5 }
 0x205   : > { %s240_s8 = sadd.f32 1e-05, %s239_s7 }
 0x207   : > { %v241_v63 = vstv %s240_s8 }
 0x208   : > { %443 = vrsqrt.f32 %v241_v63  ;;  %vm248_vm8 = vweird.f32 %v241_v63 }
 0x20e   : > { %v444_v2 = vpop.eup %443 }
 0x20f   : > { %v243_v3 = vmul.f32 %v444_v2, %v241_v63  ;;  %vm249_vm7 = vweird.f32 %v444_v2 }
 0x210   : > { %vm250_vm9 = vmor %vm248_vm8, %vm249_vm7 }
 0x211   : > { %v244_v4 = vmul.f32 %v444_v2, %v243_v3 }
 0x213   : > { %v245_v5 = vmul.f32 0.5, %v244_v4 }
 0x215   : > { %v246_v6 = vsub.f32 1.5, %v245_v5 }
 0x217   : > { %v247_v7 = vmul.f32 %v444_v2, %v246_v6 }
 0x219   : > { %v251_v9 = vsel %vm250_vm9, %v444_v2, %v247_v7 }
 0x21a   : > { %390 = vpush %v251_v9 }
 0x242   : > { %v264_v19 = vpop.permute.xlu2 %263 }
 0x243   : > { %v266_v20 = vmul.f32 %v264_v19, %v584_v0  ;;  %v267_v21 = vmul.f32 %v264_v19, %v586_v1 }
 0x24b   : > { %s391_s14 = spop %390 }
 0x24c   : > { %v253_v11 = vstv %s391_s14 }
 0x24d   : > { %v254_v12 = vmul.f32 %v253_v11, %v595_v26 }
 0x24f   : > { %v256_v14 = vmul.f32 %v254_v12, %v173_v10 }
 0x251   : > { %v258_v15 = vsub.f32 %v256_v14, %v257_v13 }
 0x253   : > { %v259_v17 = vmul.f32 %v258_v15, %v172_v59 }
 0x255   : > { %v260_v18 = vadd.f32 %v259_v17, %v174_v16 }
 0x257   : > { %270 = vperm.xlu2 %435, %v260_v18  }
 0x2b1   : > { %v271_v8 = vpop.permute.xlu2 %270 }
 0x2b2   : > { %v273_v22 = vadd.f32 %v271_v8, %v266_v20  ;;  %v274_v23 = vadd.f32 %v271_v8, %v267_v21 }
 0x2b4   : > { %275 = vst [vmem:[%s151_s25] sm:$0xff] %v273_v22 }
 0x2b5   : > { %276 = vst [vmem:[%s151_s25 + $0x8] sm:$0xff] %v274_v23 }
 0x2b6   : > { %472 = shalt.err (!%p469_p3)
}
 0x2b7   : > { %392 = dma.vmem_to_hbm [thread:$0]  (%p566_p5), %s292_s26, 256, %s294_s27, %s278_s13  }
 0x2b8 PF: > { %p398_p4 = scmp.ge.s32.totalorder %s507_s12, 2  ;;  %s305_s7 = sand.u32 1, %s495_s9  }
 0x2b9   : > { %s306_s8 = scalar_lea.sflag [#allocation3], %s305_s7 }
 0x2ba   : > { %p395_p7 = pnand %p398_p4, %p570_p6 }
 0x2bc   : > { %p396_p8 = pneg %p395_p7 }
 0x2be   : > { %490 = dma.done.wait (%p396_p8), %s306_s8, 256  }
 0x2bf   : > { %492 = vsyncadd (%p396_p8), %s306_s8, 4294967040  ;;  %p12_p9 = scmp.ge.s32.totalorder %s553_s15, 4   ;;  %s655_s9 = smov %s499_s10 }
 0x2c0   : > { %s656_s10 = smov %s503_s11  ;;  %s657_s11 = smov %s564_s18 }
 0x2c1   : > { %s658_s12 = smov %s553_s15  ;;  %14 = sbr.rel (!%p12_p9) target bundleno = 3 (0x3), region = 66 }
 0x2c6   :  { %312 = vsyncpa [#allocation3], 1 }
 0x2c7   :  { %314 = vsyncpa [#allocation3 + $0x1], 1 }

</bundles_post_ra>
